<compile_context>
chip_gen: v7x
topology: tpu7x:2x2x1
jax: 0.10.0
libtpu: 0.0.40
codegen_flags: <defaults>
</compile_context>

<pallas_src>
import jax
import jax.numpy as jnp
from jax.experimental import pallas as pl
from jax.experimental.pallas import tpu as pltpu


def fa_gcn_fused_kernel(x_ref, d_ref, b1_ref, bias1_ref, b2_ref, bias2_ref,
                        pool_ref, o_ref, xf_scr):
    """One grid step = NB samples.

    x_ref    : (NB, Tf, V*C)   bf16   raw input, rows = time, lanes = (v, c)
    d_ref    : (Th, Tf)        bf16   cosine-DFT matrix (Re(FFT), first Th bins)
    b1_ref   : (V*C,  V*C1)    bf16   fused data_bn + conv1x1 + graph operator
    bias1_ref: (1,    V*C1)    f32
    b2_ref   : (V*C1, V*C2)    bf16   fused conv1x1 + graph + residual(conv+BN)
    bias2_ref: (1,    V*C2)    f32
    pool_ref : (NB, NB*Th)     f32    per-sample temporal mean-pool matrix
    o_ref    : (NB, V*C2)      f32    pooled output, lanes = (v, c2)
    xf_scr   : (NB*Th, V*C)    bf16   scratch for the stacked DFT outputs
    """
    NB = x_ref.shape[0]
    Th = d_ref.shape[0]

    # Per-sample real-DFT over time (tiny matmuls), stacked into one
    # (NB*Th, V*C) slab so the layer matmuls below see a full M dimension.
    d = d_ref[...]
    for nb in range(NB):                                   # NB static, small
        xf_scr[pl.ds(nb * Th, Th), :] = jnp.dot(
            d, x_ref[nb], preferred_element_type=jnp.float32
        ).astype(xf_scr.dtype)
    xf = xf_scr[...]                                       # (NB*Th, V*C) bf16

    # Layer 1: data_bn + ConvTemporalGraphical (1x1 conv + A contraction), ReLU.
    z1 = jnp.dot(xf, b1_ref[...], preferred_element_type=jnp.float32)
    h = jnp.maximum(z1 + bias1_ref[...], 0.0).astype(jnp.bfloat16)   # (NB*Th, V*C1)

    # Layer 2: gcn branch + residual conv1x1+BN (both folded into b2), ReLU.
    z2 = jnp.dot(h, b2_ref[...], preferred_element_type=jnp.float32)
    y = jnp.maximum(z2 + bias2_ref[...], 0.0)                        # (NB*Th, V*C2) f32

    # Temporal mean pool per sample; result is already in (v, c2) lane order,
    # so this store is lane-dense (V*C2 wide) and needs no later transpose.
    o_ref[...] = jnp.dot(pool_ref[...], y, preferred_element_type=jnp.float32)


def model_forward(x6, p, *, K, C1=32, C2=64, eps=1e-5):
    """Pallas implementation of Model.forward. x6: (1, N, C, T, V, M) float32."""
    x = x6[0]                                   # squeeze(dim=0)
    N, C, Tf, V, M = x.shape
    assert M == 1, "reference .view(N, c, t, v) requires M == 1"
    Th = Tf // 2
    NM = N * M
    VC, VC1, VC2 = V * C, V * C1, V * C2

    # Sample-major, time-rows, (v, c)-lane layout; bf16 for the MXU matmuls.
    x_prep = jnp.transpose(x, (0, 4, 2, 3, 1)).reshape(NM, Tf, VC).astype(jnp.bfloat16)

    # Re(fft(x, T))[k] = sum_t cos(2*pi*k*t/T) * x[t]   (x real), keep Th bins.
    tt = jnp.arange(Tf, dtype=jnp.float32)
    kk = jnp.arange(Th, dtype=jnp.float32)
    D = jnp.cos(2.0 * jnp.pi * kk[:, None] * tt[None, :] / Tf).astype(jnp.bfloat16)

    # ---- layer 1 fused operator: data_bn (channel = v*C + c) + conv1x1 + A ----
    s = p['bn_gamma'] / jnp.sqrt(p['bn_var'] + eps)            # (V*C,)
    sh = p['bn_beta'] - p['bn_mean'] * s
    A1 = p['A'] * p['imp1']                                    # (K, V, V)
    W1r = p['w1'].reshape(K, C1, C)                            # [k, o, c]
    B1 = jnp.einsum('koc,kvw->vcwo', W1r, A1).reshape(VC, VC1)
    bias1 = jnp.einsum('ko,kw->wo', p['w1_b'].reshape(K, C1),
                       A1.sum(axis=1)).reshape(VC1)
    B1_eff = s[:, None] * B1                                   # BN scale folded
    bias1_eff = bias1 + sh @ B1                                # BN shift folded

    # ---- layer 2 fused operator: conv1x1 + A  +  residual conv1x1 + BN ----
    rs = p['res_gamma'] / jnp.sqrt(p['res_var'] + eps)
    Wr = p['res_w'] * rs[:, None]                              # (C2, C1)
    br = (p['res_b'] - p['res_mean']) * rs + p['res_beta']     # (C2,)
    A2 = p['A'] * p['imp2']
    W2r = p['w2'].reshape(K, C2, C1)
    B2 = jnp.einsum('koc,kvw->vcwo', W2r, A2)
    B2 = B2 + jnp.einsum('vw,oc->vcwo', jnp.eye(V, dtype=jnp.float32), Wr)
    B2 = B2.reshape(VC1, VC2)
    bias2 = (jnp.einsum('ko,kw->wo', p['w2_b'].reshape(K, C2), A2.sum(axis=1))
             + br[None, :]).reshape(VC2)

    # Samples per grid step (tunable; amortizes per-step overhead and feeds the
    # MXU M-dim).  Keep the out-block sublane dim a multiple of 8 or == NM.
    NB = 8 if NM % 8 == 0 else NM
    pool = jnp.kron(jnp.eye(NB, dtype=jnp.float32),
                    jnp.full((1, Th), 1.0 / Th, jnp.float32))  # (NB, NB*Th)

    const2 = lambda n: (0, 0)   # grid-invariant operands (could be Buffered(1) on v7x)
    out2d = pl.pallas_call(
        fa_gcn_fused_kernel,
        out_shape=jax.ShapeDtypeStruct((NM, VC2), jnp.float32),
        grid=(NM // NB,),
        in_specs=[
            pl.BlockSpec((NB, Tf, VC), lambda n: (n, 0, 0)),   # x (NB samples/step)
            pl.BlockSpec((Th, Tf), const2),                    # cosine DFT matrix
            pl.BlockSpec((VC, VC1), const2),                   # fused layer-1 operator
            pl.BlockSpec((1, VC1), const2),                    # fused layer-1 bias
            pl.BlockSpec((VC1, VC2), const2),                  # fused layer-2 operator
            pl.BlockSpec((1, VC2), const2),                    # fused layer-2 bias
            pl.BlockSpec((NB, NB * Th), const2),               # temporal pooling matrix
        ],
        out_specs=pl.BlockSpec((NB, VC2), lambda n: (n, 0)),
        scratch_shapes=[pltpu.VMEM((NB * Th, VC), jnp.bfloat16)],
        compiler_params=pltpu.CompilerParams(dimension_semantics=("parallel",)),
    )(x_prep, D,
      B1_eff.astype(jnp.bfloat16), bias1_eff[None, :].astype(jnp.float32),
      B2.astype(jnp.bfloat16), bias2[None, :].astype(jnp.float32),
      pool)

    # (NM, V*C2) -> (N, V, C2): matches squeeze(2).permute(0, 2, 1); free reshape.
    return out2d.reshape(NM, V, C2)


def model_forward_reference(x6, p, *, K, C1=32, C2=64, eps=1e-5):
    """Plain-JAX mirror of the PyTorch forward (inference-mode BN)."""
    x = x6[0]
    N, C, Tf, V, M = x.shape
    Th = Tf // 2
    x = jnp.fft.fft(x, axis=2).real[:, :, :Th, :, :]
    x = jnp.transpose(x, (0, 4, 3, 1, 2)).reshape(N * M, V * C, Th)
    s = p['bn_gamma'] / jnp.sqrt(p['bn_var'] + eps)
    x = (x - p['bn_mean'][None, :, None]) * s[None, :, None] + p['bn_beta'][None, :, None]
    x = x.reshape(N, M, V, C, Th).transpose(0, 1, 3, 4, 2).reshape(N * M, C, Th, V)

    def gcn(xin, W, b, A):
        z = jnp.einsum('oc,nctv->notv', W, xin) + b[None, :, None, None]
        nb, o, t2, v2 = z.shape
        z = z.reshape(nb, K, o // K, t2, v2)
        return jnp.einsum('nkctv,kvw->nctw', z, A)

    h = jnp.maximum(gcn(x, p['w1'], p['w1_b'], p['A'] * p['imp1']), 0.0)

    res = jnp.einsum('oc,nctv->notv', p['res_w'], h) + p['res_b'][None, :, None, None]
    rs = p['res_gamma'] / jnp.sqrt(p['res_var'] + eps)
    res = (res - p['res_mean'][None, :, None, None]) * rs[None, :, None, None] \
          + p['res_beta'][None, :, None, None]
    y = jnp.maximum(res + gcn(h, p['w2'], p['w2_b'], p['A'] * p['imp2']), 0.0)

    c = y.shape[1]
    y = y.reshape(N, c, Th, V).mean(axis=2)      # avg_pool2d((T,1)) + squeeze(2)
    return jnp.transpose(y, (0, 2, 1))


if __name__ == "__main__":
    # Small, module-consistent shapes: N=16, in_channels=3, T=16, V=8 joints,
    # M=1 person, spatial kernel K=3 (A has 3 partitions).  NB=8 samples per
    # grid step -> grid of 2 steps.
    N, C, Tf, V, M, K = 16, 3, 16, 8, 1, 3
    C1, C2 = 32, 64

    key = jax.random.PRNGKey(0)
    ks = jax.random.split(key, 16)
    p = {
        # synthetic graph adjacency (Graph class not provided) + edge importance
        'A': jax.random.uniform(ks[0], (K, V, V), jnp.float32, 0.0, 0.5),
        'imp1': jnp.ones((K, V, V), jnp.float32),
        'imp2': jnp.ones((K, V, V), jnp.float32),
        # data_bn = BatchNorm1d(C*V), channel index = v*C + c
        'bn_gamma': 1.0 + 0.1 * jax.random.normal(ks[1], (V * C,), jnp.float32),
        'bn_beta': 0.1 * jax.random.normal(ks[2], (V * C,), jnp.float32),
        'bn_mean': 0.1 * jax.random.normal(ks[3], (V * C,), jnp.float32),
        'bn_var': 0.5 + jax.random.uniform(ks[4], (V * C,), jnp.float32),
        # ConvTemporalGraphical layer 1: Conv2d(C, K*32, 1x1)
        'w1': 0.1 * jax.random.normal(ks[5], (K * C1, C), jnp.float32),
        'w1_b': 0.1 * jax.random.normal(ks[6], (K * C1,), jnp.float32),
        # ConvTemporalGraphical layer 2: Conv2d(32, K*64, 1x1)
        'w2': 0.1 * jax.random.normal(ks[7], (K * C2, C1), jnp.float32),
        'w2_b': 0.1 * jax.random.normal(ks[8], (K * C2,), jnp.float32),
        # residual branch of layer 2: Conv2d(32, 64, 1x1) + BatchNorm2d(64)
        'res_w': 0.1 * jax.random.normal(ks[9], (C2, C1), jnp.float32),
        'res_b': 0.1 * jax.random.normal(ks[10], (C2,), jnp.float32),
        'res_gamma': 1.0 + 0.1 * jax.random.normal(ks[11], (C2,), jnp.float32),
        'res_beta': 0.1 * jax.random.normal(ks[12], (C2,), jnp.float32),
        'res_mean': 0.1 * jax.random.normal(ks[13], (C2,), jnp.float32),
        'res_var': 0.5 + jax.random.uniform(ks[14], (C2,), jnp.float32),
    }
    # forward() does x.squeeze(dim=0) first -> give a leading singleton dim.
    x6 = jax.random.normal(ks[15], (1, N, C, Tf, V, M), jnp.float32)

    out = jax.block_until_ready(model_forward(x6, p, K=K, C1=C1, C2=C2))
    ref = jax.block_until_ready(model_forward_reference(x6, p, K=K, C1=C1, C2=C2))

    assert out.shape == (N, V, C2), out.shape
    err = float(jnp.max(jnp.abs(out - ref)))
    assert err < 5e-2, f"max abs error too large: {err}"
    print("KERNEL_OK")
</pallas_src>

<mosaic_0001>
module attributes {stable_mosaic.version = 11 : i64} {
  func.func @fa_gcn_fused_kernel(%arg0: i32, %arg1: memref<8x16x24xbf16, #tpu.memory_space<vmem>>, %arg2: memref<8x16xbf16, #tpu.memory_space<vmem>>, %arg3: memref<24x256xbf16, #tpu.memory_space<vmem>>, %arg4: memref<1x256xf32, #tpu.memory_space<vmem>>, %arg5: memref<256x512xbf16, #tpu.memory_space<vmem>>, %arg6: memref<1x512xf32, #tpu.memory_space<vmem>>, %arg7: memref<8x64xf32, #tpu.memory_space<vmem>>, %arg8: memref<8x512xf32, #tpu.memory_space<vmem>>, %arg9: memref<64x24xbf16, #tpu.memory_space<vmem>>) attributes {dimension_semantics = [#tpu.dimension_semantics<parallel>], iteration_bounds = array<i64: 2>, scalar_prefetch = 0 : i64, scratch_operands = 1 : i64, tpu.core_type = #tpu.core_type<tc>, window_params = [{transform_indices = @transform_0, window_bounds = array<i64: 8, 16, 24>}, {pipeline_mode = #tpu.pipeline_mode<synchronous>, transform_indices = @transform_1, window_bounds = array<i64: 8, 16>}, {pipeline_mode = #tpu.pipeline_mode<synchronous>, transform_indices = @transform_2, window_bounds = array<i64: 24, 256>}, {pipeline_mode = #tpu.pipeline_mode<synchronous>, transform_indices = @transform_3, window_bounds = array<i64: 1, 256>}, {pipeline_mode = #tpu.pipeline_mode<synchronous>, transform_indices = @transform_4, window_bounds = array<i64: 256, 512>}, {pipeline_mode = #tpu.pipeline_mode<synchronous>, transform_indices = @transform_5, window_bounds = array<i64: 1, 512>}, {pipeline_mode = #tpu.pipeline_mode<synchronous>, transform_indices = @transform_6, window_bounds = array<i64: 8, 64>}, {transform_indices = @transform_7, window_bounds = array<i64: 8, 512>}]} {
    %c0 = arith.constant 0 : index
    %c0_0 = arith.constant 0 : index
    %0 = vector.load %arg2[%c0, %c0_0] : memref<8x16xbf16, #tpu.memory_space<vmem>>, vector<8x16xbf16>
    %c0_1 = arith.constant 0 : index
    %c0_2 = arith.constant 0 : index
    %c0_3 = arith.constant 0 : index
    %1 = vector.load %arg1[%c0_1, %c0_2, %c0_3] : memref<8x16x24xbf16, #tpu.memory_space<vmem>>, vector<1x16x24xbf16>
    %2 = vector.shape_cast %1 : vector<1x16x24xbf16> to vector<16x24xbf16>
    %cst = arith.constant dense<0.000000e+00> : vector<8x24xf32>
    %3 = tpu.matmul %0, %2, %cst {dimension_numbers = #tpu.dot_dimension_numbers<[1], [0], [0], [1], [0, 0, 1, 1], [], []>} : vector<8x16xbf16>, vector<16x24xbf16>, vector<8x24xf32> -> vector<8x24xf32>
    %4 = arith.truncf %3 : vector<8x24xf32> to vector<8x24xbf16>
    %c0_4 = arith.constant 0 : index
    %c0_5 = arith.constant 0 : index
    %5 = vector.load %arg9[%c0_4, %c0_5] : memref<64x24xbf16, #tpu.memory_space<vmem>>, vector<8x24xbf16>
    tpu.vector_store %arg9[%c0_4, %c0_5], %4 {strides = array<i32>} : memref<64x24xbf16, #tpu.memory_space<vmem>>, vector<8x24xbf16>,
    %c1 = arith.constant 1 : index
    %c0_6 = arith.constant 0 : index
    %c0_7 = arith.constant 0 : index
    %6 = vector.load %arg1[%c1, %c0_6, %c0_7] : memref<8x16x24xbf16, #tpu.memory_space<vmem>>, vector<1x16x24xbf16>
    %7 = vector.shape_cast %6 : vector<1x16x24xbf16> to vector<16x24xbf16>
    %cst_8 = arith.constant dense<0.000000e+00> : vector<8x24xf32>
    %8 = tpu.matmul %0, %7, %cst_8 {dimension_numbers = #tpu.dot_dimension_numbers<[1], [0], [0], [1], [0, 0, 1, 1], [], []>} : vector<8x16xbf16>, vector<16x24xbf16>, vector<8x24xf32> -> vector<8x24xf32>
    %9 = arith.truncf %8 : vector<8x24xf32> to vector<8x24xbf16>
    %c8 = arith.constant 8 : index
    %c0_9 = arith.constant 0 : index
    %10 = vector.load %arg9[%c8, %c0_9] : memref<64x24xbf16, #tpu.memory_space<vmem>>, vector<8x24xbf16>
    tpu.vector_store %arg9[%c8, %c0_9], %9 {strides = array<i32>} : memref<64x24xbf16, #tpu.memory_space<vmem>>, vector<8x24xbf16>,
    %c2 = arith.constant 2 : index
    %c0_10 = arith.constant 0 : index
    %c0_11 = arith.constant 0 : index
    %11 = vector.load %arg1[%c2, %c0_10, %c0_11] : memref<8x16x24xbf16, #tpu.memory_space<vmem>>, vector<1x16x24xbf16>
    %12 = vector.shape_cast %11 : vector<1x16x24xbf16> to vector<16x24xbf16>
    %cst_12 = arith.constant dense<0.000000e+00> : vector<8x24xf32>
    %13 = tpu.matmul %0, %12, %cst_12 {dimension_numbers = #tpu.dot_dimension_numbers<[1], [0], [0], [1], [0, 0, 1, 1], [], []>} : vector<8x16xbf16>, vector<16x24xbf16>, vector<8x24xf32> -> vector<8x24xf32>
    %14 = arith.truncf %13 : vector<8x24xf32> to vector<8x24xbf16>
    %c16 = arith.constant 16 : index
    %c0_13 = arith.constant 0 : index
    %15 = vector.load %arg9[%c16, %c0_13] : memref<64x24xbf16, #tpu.memory_space<vmem>>, vector<8x24xbf16>
    tpu.vector_store %arg9[%c16, %c0_13], %14 {strides = array<i32>} : memref<64x24xbf16, #tpu.memory_space<vmem>>, vector<8x24xbf16>,
    %c3 = arith.constant 3 : index
    %c0_14 = arith.constant 0 : index
    %c0_15 = arith.constant 0 : index
    %16 = vector.load %arg1[%c3, %c0_14, %c0_15] : memref<8x16x24xbf16, #tpu.memory_space<vmem>>, vector<1x16x24xbf16>
    %17 = vector.shape_cast %16 : vector<1x16x24xbf16> to vector<16x24xbf16>
    %cst_16 = arith.constant dense<0.000000e+00> : vector<8x24xf32>
    %18 = tpu.matmul %0, %17, %cst_16 {dimension_numbers = #tpu.dot_dimension_numbers<[1], [0], [0], [1], [0, 0, 1, 1], [], []>} : vector<8x16xbf16>, vector<16x24xbf16>, vector<8x24xf32> -> vector<8x24xf32>
    %19 = arith.truncf %18 : vector<8x24xf32> to vector<8x24xbf16>
    %c24 = arith.constant 24 : index
    %c0_17 = arith.constant 0 : index
    %20 = vector.load %arg9[%c24, %c0_17] : memref<64x24xbf16, #tpu.memory_space<vmem>>, vector<8x24xbf16>
    tpu.vector_store %arg9[%c24, %c0_17], %19 {strides = array<i32>} : memref<64x24xbf16, #tpu.memory_space<vmem>>, vector<8x24xbf16>,
    %c4 = arith.constant 4 : index
    %c0_18 = arith.constant 0 : index
    %c0_19 = arith.constant 0 : index
    %21 = vector.load %arg1[%c4, %c0_18, %c0_19] : memref<8x16x24xbf16, #tpu.memory_space<vmem>>, vector<1x16x24xbf16>
    %22 = vector.shape_cast %21 : vector<1x16x24xbf16> to vector<16x24xbf16>
    %cst_20 = arith.constant dense<0.000000e+00> : vector<8x24xf32>
    %23 = tpu.matmul %0, %22, %cst_20 {dimension_numbers = #tpu.dot_dimension_numbers<[1], [0], [0], [1], [0, 0, 1, 1], [], []>} : vector<8x16xbf16>, vector<16x24xbf16>, vector<8x24xf32> -> vector<8x24xf32>
    %24 = arith.truncf %23 : vector<8x24xf32> to vector<8x24xbf16>
    %c32 = arith.constant 32 : index
    %c0_21 = arith.constant 0 : index
    %25 = vector.load %arg9[%c32, %c0_21] : memref<64x24xbf16, #tpu.memory_space<vmem>>, vector<8x24xbf16>
    tpu.vector_store %arg9[%c32, %c0_21], %24 {strides = array<i32>} : memref<64x24xbf16, #tpu.memory_space<vmem>>, vector<8x24xbf16>,
    %c5 = arith.constant 5 : index
    %c0_22 = arith.constant 0 : index
    %c0_23 = arith.constant 0 : index
    %26 = vector.load %arg1[%c5, %c0_22, %c0_23] : memref<8x16x24xbf16, #tpu.memory_space<vmem>>, vector<1x16x24xbf16>
    %27 = vector.shape_cast %26 : vector<1x16x24xbf16> to vector<16x24xbf16>
    %cst_24 = arith.constant dense<0.000000e+00> : vector<8x24xf32>
    %28 = tpu.matmul %0, %27, %cst_24 {dimension_numbers = #tpu.dot_dimension_numbers<[1], [0], [0], [1], [0, 0, 1, 1], [], []>} : vector<8x16xbf16>, vector<16x24xbf16>, vector<8x24xf32> -> vector<8x24xf32>
    %29 = arith.truncf %28 : vector<8x24xf32> to vector<8x24xbf16>
    %c40 = arith.constant 40 : index
    %c0_25 = arith.constant 0 : index
    %30 = vector.load %arg9[%c40, %c0_25] : memref<64x24xbf16, #tpu.memory_space<vmem>>, vector<8x24xbf16>
    tpu.vector_store %arg9[%c40, %c0_25], %29 {strides = array<i32>} : memref<64x24xbf16, #tpu.memory_space<vmem>>, vector<8x24xbf16>,
    %c6 = arith.constant 6 : index
    %c0_26 = arith.constant 0 : index
    %c0_27 = arith.constant 0 : index
    %31 = vector.load %arg1[%c6, %c0_26, %c0_27] : memref<8x16x24xbf16, #tpu.memory_space<vmem>>, vector<1x16x24xbf16>
    %32 = vector.shape_cast %31 : vector<1x16x24xbf16> to vector<16x24xbf16>
    %cst_28 = arith.constant dense<0.000000e+00> : vector<8x24xf32>
    %33 = tpu.matmul %0, %32, %cst_28 {dimension_numbers = #tpu.dot_dimension_numbers<[1], [0], [0], [1], [0, 0, 1, 1], [], []>} : vector<8x16xbf16>, vector<16x24xbf16>, vector<8x24xf32> -> vector<8x24xf32>
    %34 = arith.truncf %33 : vector<8x24xf32> to vector<8x24xbf16>
    %c48 = arith.constant 48 : index
    %c0_29 = arith.constant 0 : index
    %35 = vector.load %arg9[%c48, %c0_29] : memref<64x24xbf16, #tpu.memory_space<vmem>>, vector<8x24xbf16>
    tpu.vector_store %arg9[%c48, %c0_29], %34 {strides = array<i32>} : memref<64x24xbf16, #tpu.memory_space<vmem>>, vector<8x24xbf16>,
    %c7 = arith.constant 7 : index
    %c0_30 = arith.constant 0 : index
    %c0_31 = arith.constant 0 : index
    %36 = vector.load %arg1[%c7, %c0_30, %c0_31] : memref<8x16x24xbf16, #tpu.memory_space<vmem>>, vector<1x16x24xbf16>
    %37 = vector.shape_cast %36 : vector<1x16x24xbf16> to vector<16x24xbf16>
    %cst_32 = arith.constant dense<0.000000e+00> : vector<8x24xf32>
    %38 = tpu.matmul %0, %37, %cst_32 {dimension_numbers = #tpu.dot_dimension_numbers<[1], [0], [0], [1], [0, 0, 1, 1], [], []>} : vector<8x16xbf16>, vector<16x24xbf16>, vector<8x24xf32> -> vector<8x24xf32>
    %39 = arith.truncf %38 : vector<8x24xf32> to vector<8x24xbf16>
    %c56 = arith.constant 56 : index
    %c0_33 = arith.constant 0 : index
    %40 = vector.load %arg9[%c56, %c0_33] : memref<64x24xbf16, #tpu.memory_space<vmem>>, vector<8x24xbf16>
    tpu.vector_store %arg9[%c56, %c0_33], %39 {strides = array<i32>} : memref<64x24xbf16, #tpu.memory_space<vmem>>, vector<8x24xbf16>,
    %c0_34 = arith.constant 0 : index
    %c0_35 = arith.constant 0 : index
    %41 = vector.load %arg9[%c0_34, %c0_35] : memref<64x24xbf16, #tpu.memory_space<vmem>>, vector<64x24xbf16>
    %c0_36 = arith.constant 0 : index
    %c0_37 = arith.constant 0 : index
    %42 = vector.load %arg3[%c0_36, %c0_37] : memref<24x256xbf16, #tpu.memory_space<vmem>>, vector<24x256xbf16>
    %cst_38 = arith.constant dense<0.000000e+00> : vector<64x256xf32>
    %43 = tpu.matmul %41, %42, %cst_38 {dimension_numbers = #tpu.dot_dimension_numbers<[1], [0], [0], [1], [0, 0, 1, 1], [], []>} : vector<64x24xbf16>, vector<24x256xbf16>, vector<64x256xf32> -> vector<64x256xf32>
    %c0_39 = arith.constant 0 : index
    %c0_40 = arith.constant 0 : index
    %44 = vector.load %arg4[%c0_39, %c0_40] : memref<1x256xf32, #tpu.memory_space<vmem>>, vector<1x256xf32>
    %45 = vector.broadcast %44 : vector<1x256xf32> to vector<64x256xf32>
    %46 = arith.addf %43, %45 : vector<64x256xf32>
    %cst_41 = arith.constant 0.000000e+00 : f32
    %47 = vector.broadcast %cst_41 : f32 to vector<64x256xf32>
    %48 = arith.maximumf %46, %47 : vector<64x256xf32>
    %49 = arith.truncf %48 : vector<64x256xf32> to vector<64x256xbf16>
    %c0_42 = arith.constant 0 : index
    %c0_43 = arith.constant 0 : index
    %50 = vector.load %arg5[%c0_42, %c0_43] : memref<256x512xbf16, #tpu.memory_space<vmem>>, vector<256x512xbf16>
    %cst_44 = arith.constant dense<0.000000e+00> : vector<64x512xf32>
    %51 = tpu.matmul %49, %50, %cst_44 {dimension_numbers = #tpu.dot_dimension_numbers<[1], [0], [0], [1], [0, 0, 1, 1], [], []>} : vector<64x256xbf16>, vector<256x512xbf16>, vector<64x512xf32> -> vector<64x512xf32>
    %c0_45 = arith.constant 0 : index
    %c0_46 = arith.constant 0 : index
    %52 = vector.load %arg6[%c0_45, %c0_46] : memref<1x512xf32, #tpu.memory_space<vmem>>, vector<1x512xf32>
    %53 = vector.broadcast %52 : vector<1x512xf32> to vector<64x512xf32>
    %54 = arith.addf %51, %53 : vector<64x512xf32>
    %cst_47 = arith.constant 0.000000e+00 : f32
    %55 = vector.broadcast %cst_47 : f32 to vector<64x512xf32>
    %56 = arith.maximumf %54, %55 : vector<64x512xf32>
    %c0_48 = arith.constant 0 : index
    %c0_49 = arith.constant 0 : index
    %57 = vector.load %arg7[%c0_48, %c0_49] : memref<8x64xf32, #tpu.memory_space<vmem>>, vector<8x64xf32>
    %cst_50 = arith.constant dense<0.000000e+00> : vector<8x512xf32>
    %58 = tpu.matmul %57, %56, %cst_50 {dimension_numbers = #tpu.dot_dimension_numbers<[1], [0], [0], [1], [0, 0, 1, 1], [], []>} : vector<8x64xf32>, vector<64x512xf32>, vector<8x512xf32> -> vector<8x512xf32>
    %c0_51 = arith.constant 0 : index
    %c0_52 = arith.constant 0 : index
    %59 = vector.load %arg8[%c0_51, %c0_52] : memref<8x512xf32, #tpu.memory_space<vmem>>, vector<8x512xf32>
    tpu.vector_store %arg8[%c0_51, %c0_52], %58 {strides = array<i32>} : memref<8x512xf32, #tpu.memory_space<vmem>>, vector<8x512xf32>,
    return
  }
  func.func @transform_0(%arg0: i32) -> (i32, i32, i32) {
    %c0_i32 = arith.constant 0 : i32
    %c0_i32_0 = arith.constant 0 : i32
    %c0_i32_1 = arith.constant 0 : i32
    return %arg0, %c0_i32, %c0_i32_0 : i32, i32, i32
  }
  func.func @transform_1(%arg0: i32) -> (i32, i32) {
    %c0_i32 = arith.constant 0 : i32
    %c0_i32_0 = arith.constant 0 : i32
    %c0_i32_1 = arith.constant 0 : i32
    return %c0_i32, %c0_i32_0 : i32, i32
  }
  func.func @transform_2(%arg0: i32) -> (i32, i32) {
    %c0_i32 = arith.constant 0 : i32
    %c0_i32_0 = arith.constant 0 : i32
    %c0_i32_1 = arith.constant 0 : i32
    return %c0_i32, %c0_i32_0 : i32, i32
  }
  func.func @transform_3(%arg0: i32) -> (i32, i32) {
    %c0_i32 = arith.constant 0 : i32
    %c0_i32_0 = arith.constant 0 : i32
    %c0_i32_1 = arith.constant 0 : i32
    return %c0_i32, %c0_i32_0 : i32, i32
  }
  func.func @transform_4(%arg0: i32) -> (i32, i32) {
    %c0_i32 = arith.constant 0 : i32
    %c0_i32_0 = arith.constant 0 : i32
    %c0_i32_1 = arith.constant 0 : i32
    return %c0_i32, %c0_i32_0 : i32, i32
  }
  func.func @transform_5(%arg0: i32) -> (i32, i32) {
    %c0_i32 = arith.constant 0 : i32
    %c0_i32_0 = arith.constant 0 : i32
    %c0_i32_1 = arith.constant 0 : i32
    return %c0_i32, %c0_i32_0 : i32, i32
  }
  func.func @transform_6(%arg0: i32) -> (i32, i32) {
    %c0_i32 = arith.constant 0 : i32
    %c0_i32_0 = arith.constant 0 : i32
    %c0_i32_1 = arith.constant 0 : i32
    return %c0_i32, %c0_i32_0 : i32, i32
  }
  func.func @transform_7(%arg0: i32) -> (i32, i32) {
    %c0_i32 = arith.constant 0 : i32
    %c0_i32_0 = arith.constant 0 : i32
    return %arg0, %c0_i32 : i32, i32
  }
}

</mosaic_0001>

<bundles_post_ra>
// kernel: tpu_custom_call.1
= control target key start
LH: loop header
LB: loop body
LE: loop exit
PB: predicated region body
PF: predicated region fallthrough
CT: control target
= control target key end

     0   :  { %12 = vsyncpa [#allocation4], 0  ;;  %s2806_s0 = inlined_call_operand.hbm [shape: bf16[16,16,24], index: 0, kind: input, shape index: {}]   ;;  %s2807_s1 = inlined_call_operand.hbm [shape: bf16[8,16], index: 1, kind: input, shape index: {}]   ;;  %s2808_s2 = inlined_call_operand.hbm [shape: bf16[24,256], index: 2, kind: input, shape index: {}]   ;;  %s2809_s3 = inlined_call_operand.vmem [shape: f32[1,256], index: 3, kind: input, shape index: {}]   ;;  %s2810_s4 = inlined_call_operand.hbm [shape: bf16[256,512], index: 4, kind: input, shape index: {}]   ;;  %s2811_s5 = inlined_call_operand.vmem [shape: f32[1,512], index: 5, kind: input, shape index: {}]   ;;  %s2812_s6 = inlined_call_operand.vmem [shape: f32[8,64], index: 6, kind: input, shape index: {}]   ;;  %s2813_s7 = inlined_call_operand.hbm [shape: f32[16,512], index: 7, kind: output, shape index: {}]  }
   0x1   :  { %14 = vsyncpa [#allocation4 + $0x1], 0 }
   0x2   :  { %15 = vsyncpa [#allocation7], 0 }
   0x3   :  { %16 = vsyncpa [#allocation10], 0 }
   0x4   :  { %17 = vsyncpa [#allocation5], 0 }
   0x5   :  { %19 = vsyncpa [#allocation5 + $0x1], 0  ;;  %s2432_s24 = smov 0   ;;  %s2434_s25 = smov 0  }
   0x6   :  { %s2436_s26 = smov 0   ;;  %s2438_s27 = smov 0  }
   0x7 LB: > { %s2453_s28 = sadd.s32 4294967295, %s2376_s27   ;;  %s1768_s29 = sadd.s32 4294967294, %s2376_s27   ;;  %s2376_s27 = sphi %s2438_s27, %s2836_s27   ;;  %s2372_s26 = sphi %s2436_s26, %s2835_s26   ;;  %s2368_s25 = sphi %s2434_s25, %s2834_s25   ;;  %s2364_s24 = sphi %s2432_s24, %s2833_s24  }
   0x8   : > { %p45_p0 = scmp.ne.s32.totalorder %s2368_s25, %s2364_s24  ;;  %p2814_p1 = scmp.eq.s32.totalorder %s2453_s28, 0 }
   0x9   : > { %p201_p3 = scmp.eq.s32.totalorder %s1768_s29, 1  ;;  %p1769_p5 = scmp.ge.s32.totalorder %s2376_s27, 1 }
   0xa   : > { %p2462_p4 = por %p2814_p1, %p45_p0  ;;  %p208_p7 = scmp.lt.s32.totalorder %s2376_s27, 3 }
   0xb   : > { %p2467_p6 = por %p201_p3, %p45_p0  ;;  %s2378_s10 = smov [#allocation6]  }
   0xc   : > { %s2817_s30 = scalar_select %p2462_p4, 1, 0 }
   0xd   : > { %s2818_s8 = scalar_select %p2467_p6, 1, 0 }
   0xe   : > { %p2472_p8 = pnand %p1769_p5, %p208_p7  ;;  %s221_s11 = sshll.u32 %s2378_s10, 4  ;;  %s222_s11 = int_to_ptr.vmem [resolvable:$true] %s221_s11 }
   0xf   : > { %s2379_s12 = smov [#allocation8]   ;;  %s2380_s15 = smov [#allocation9]  }
  0x10   : > { %s2819_s9 = scalar_select %p2472_p8, 1, 0 }
  0x11   : > { %p2009_p10 = pneg %p2472_p8  ;;  %s231_s13 = sshll.u32 %s2379_s12, 4  ;;  %s2485_s13 = int_to_ptr.vmem [resolvable:$true] %s231_s13 }
  0x12   : > { %s2487_s16 = sshll.u32 %s2380_s15, 4  ;;  %s2188_s19 = scalar_lea.hbm %s2807_s1, 64  ;;  %s248_s16 = int_to_ptr.vmem [resolvable:$true] %s2487_s16 }
  0x13   : > { %p2481_p11 = pnand %p2009_p10, %p2814_p1  ;;  %p2189_p12 = scmp.ne.s32.totalorder %s2807_s1, %s2188_s19 }
  0x14   : > { %p2195_p5 = scmp.lt.u32.totalorder %s2188_s19, %s2807_s1 }
  0x15   : > { %p2497_p13 = pneg %p2481_p11 }
  0x17   : > { %p2191_p0 = pnand %p2497_p13, %p2189_p12 }
  0x19   : > { %p2192_p3 = pneg %p2191_p0 }
  0x1b   : > { %p2197_p7 = pnand %p2195_p5, %p2192_p3 }
  0x1d   : > { %2200 = shalt.err (!%p2197_p7)
}
  0x1e   : > { %s2201_s10 = scalar_lea.vmem %s222_s11, 64  ;;  %p2209_p2 = scmp.lt.s32.totalorder %s222_s11, %s222_s11 }
  0x1f   : > { %p2202_p10 = scmp.ne.s32.totalorder %s222_s11, %s2201_s10  ;;  %p2210_p6 = scmp.lt.s32.totalorder %s2201_s10, %s2201_s10 }
  0x21   : > { %p2204_p9 = pnand %p2202_p10, %p2497_p13  ;;  %p2211_p4 = por %p2210_p6, %p2209_p2 }
  0x23   : > { %p2205_p1 = pneg %p2204_p9 }
  0x25   : > { %p2212_p8 = pnand %p2211_p4, %p2205_p1 }
  0x27   : > { %2215 = shalt.err (!%p2212_p8)
}
  0x28   : > { %2012 = dma.hbm_to_vmem [thread:$0]  (!%p2481_p11), %s2807_s1, 64, %s222_s11, [#allocation7]  }
  0x29   : > { %s2216_s19 = scalar_lea.hbm %s2808_s2, 384 }
  0x2a   : > { %p2217_p9 = scmp.ne.s32.totalorder %s2808_s2, %s2216_s19  ;;  %p2223_p1 = scmp.lt.u32.totalorder %s2216_s19, %s2808_s2 }
  0x2c   : > { %p2219_p12 = pnand %p2217_p9, %p2497_p13 }
  0x2e   : > { %p2220_p2 = pneg %p2219_p12 }
  0x30   : > { %p2225_p4 = pnand %p2223_p1, %p2220_p2 }
  0x32   : > { %2228 = shalt.err (!%p2225_p4)
}
  0x33   : > { %s2229_s11 = scalar_lea.vmem %s2485_s13, 384  ;;  %p2237_p3 = scmp.lt.s32.totalorder %s2485_s13, %s2485_s13 }
  0x34   : > { %p2230_p6 = scmp.ne.s32.totalorder %s2485_s13, %s2229_s11  ;;  %p2238_p5 = scmp.lt.s32.totalorder %s2229_s11, %s2229_s11 }
  0x36   : > { %p2232_p8 = pnand %p2230_p6, %p2497_p13  ;;  %p2239_p7 = por %p2238_p5, %p2237_p3 }
  0x38   : > { %p2233_p0 = pneg %p2232_p8 }
  0x3a   : > { %p2240_p10 = pnand %p2239_p7, %p2233_p0 }
  0x3c   : > { %2243 = shalt.err (!%p2240_p10)
}
  0x3d   : > { %s2381_s10 = smov 128   ;;  %s2382_s12 = smov 8  }
  0x3e   : > { %2015 = dma.hbm_to_vmem [thread:$0]  (!%p2481_p11), %s2808_s2, 384, %s2485_s13, [#allocation7], %s2381_s10, %s2381_s10, %s2382_s12  }
  0x3f   : > { %s2244_s20 = scalar_lea.hbm %s2810_s4, 8192 }
  0x40   : > { %p2245_p9 = scmp.ne.s32.totalorder %s2810_s4, %s2244_s20  ;;  %p2251_p1 = scmp.lt.u32.totalorder %s2244_s20, %s2810_s4 }
  0x42   : > { %p2247_p12 = pnand %p2245_p9, %p2497_p13 }
  0x44   : > { %p2248_p2 = pneg %p2247_p12 }
  0x46   : > { %p2253_p4 = pnand %p2251_p1, %p2248_p2 }
  0x48   : > { %2256 = shalt.err (!%p2253_p4)
}
  0x49   : > { %s2257_s15 = scalar_lea.vmem %s248_s16, 8192  ;;  %p2265_p3 = scmp.lt.s32.totalorder %s248_s16, %s248_s16 }
  0x4a   : > { %p2258_p6 = scmp.ne.s32.totalorder %s248_s16, %s2257_s15  ;;  %p2266_p5 = scmp.lt.s32.totalorder %s2257_s15, %s2257_s15 }
  0x4c   : > { %p2260_p8 = pnand %p2258_p6, %p2497_p13  ;;  %p2267_p7 = por %p2266_p5, %p2265_p3 }
  0x4e   : > { %p2261_p0 = pneg %p2260_p8 }
  0x50   : > { %p2268_p10 = pnand %p2267_p7, %p2261_p0 }
  0x52   : > { %2271 = shalt.err (!%p2268_p10)
}
  0x53   : > { %s2383_s13 = smov 256   ;;  %s2384_s22 = smov 16  }
  0x54   : > { %2018 = dma.hbm_to_vmem [thread:$0]  (!%p2481_p11), %s2810_s4, 8192, %s248_s16, [#allocation10], %s2383_s13, %s2383_s13, %s2384_s22  }
  0x55   : > { %s2556_s17 = sadd.s32 1, %s2376_s27   ;;  %s32_s19 = sadd.s32 1, %s2372_s26 }
  0x56   : > { %s29_s18 = ssub.s32 %s2376_s27, %s2556_s17  ;;  %p39_p9 = scmp.ne.s32.totalorder %s2372_s26, %s2368_s25 }
  0x57   : > { %p30_p13 = scmp.eq.s32.totalorder %s29_s18, 0  ;;  %p40_p12 = scmp.eq.s32.totalorder %s2376_s27, 0 }
  0x58   : > { %p2030_p2 = scmp.lt.s32.totalorder %s2376_s27, 2  ;;  %p2822_p4 = scmp.eq.s32.totalorder %s2453_s28, 1 }
  0x59   : > { %s2566_s20 = scalar_select %p30_p13, %s2372_s26, %s32_s19  }
  0x5a   : > { %p41_p1 = por %p40_p12, %p39_p9  ;;  %p2570_p6 = por %p2822_p4, %p39_p9 }
  0x5b   : > { %s267_s14 = sand.u32 1, %s2372_s26   ;;  %s1895_s23 = sshll.u32 %s2376_s27, 10 }
  0x5c   : > { %s1774_s16 = sshll.u32 %s267_s14, 6  ;;  %s2579_s15 = scalar_lea.hbm %s2806_s0, %s1895_s23 }
  0x5d   : > { %s271_s13 = scalar_lea.vmem [#allocation3], %s1774_s16  ;;  %p2581_p11 = pnand %p2030_p2, %p41_p1 }
  0x5e   : > { %s279_s22 = sshll.u32 %s271_s13, 4  ;;  %s2587_s12 = scalar_lea.sflag [#allocation4], %s267_s14  ;;  %s2585_s22 = int_to_ptr.vmem [resolvable:$true] %s279_s22 }
  0x5f   : > { %s2272_s18 = scalar_lea.hbm %s2579_s15, 1024  ;;  %p2274_p0 = pneg %p2581_p11 }
  0x60   : > { %p2273_p8 = scmp.ne.s32.totalorder %s2579_s15, %s2272_s18  ;;  %s2277_s16 = scalar_lea.hbm %s2806_s0, 2048 }
  0x61   : > { %p2278_p7 = scmp.lt.u32.totalorder %s2579_s15, %s2806_s0  ;;  %p2279_p10 = scmp.lt.u32.totalorder %s2277_s16, %s2272_s18 }
  0x62   : > { %p2275_p3 = pnand %p2274_p0, %p2273_p8  ;;  %p2281_p9 = scmp.lt.u32.totalorder %s2272_s18, %s2579_s15 }
  0x63   : > { %p2280_p13 = por %p2279_p10, %p2278_p7 }
  0x64   : > { %p2276_p5 = pneg %p2275_p3 }
  0x65   : > { %p2282_p12 = por %p2281_p9, %p2280_p13 }
  0x67   : > { %p2283_p2 = pnand %p2282_p12, %p2276_p5 }
  0x69   : > { %2286 = shalt.err (!%p2283_p2)
}
  0x6a   : > { %s2287_s14 = scalar_lea.vmem %s2585_s22, 1024  ;;  %s2385_s13 = smov [#allocation3]  }
  0x6b   : > { %p2288_p1 = scmp.ne.s32.totalorder %s2585_s22, %s2287_s14  ;;  %s2292_s19 = sshll.u32 %s2385_s13, 4  ;;  %s2293_s19 = int_to_ptr.vmem [resolvable:$false] %s2292_s19 }
  0x6c   : > { %s2294_s23 = scalar_lea.vmem %s2293_s19, 2048  ;;  %p2295_p3 = scmp.lt.s32.totalorder %s2585_s22, %s2293_s19 }
  0x6d   : > { %p2290_p4 = pnand %p2288_p1, %p2274_p0  ;;  %p2296_p7 = scmp.lt.s32.totalorder %s2294_s23, %s2287_s14 }
  0x6f   : > { %p2291_p8 = pneg %p2290_p4  ;;  %p2297_p10 = por %p2296_p7, %p2295_p3 }
  0x71   : > { %p2298_p13 = pnand %p2297_p10, %p2291_p8 }
  0x73   : > { %2301 = shalt.err (!%p2298_p13)
}
  0x74   : > { %s2386_s18 = smov 64   ;;  %s2387_s16 = smov 4  }
  0x75   : > { %2022 = dma.hbm_to_vmem [thread:$0]  (!%p2581_p11), %s2579_s15, 1024, %s2585_s22, %s2587_s12, %s2386_s18, %s2386_s18, %s2387_s16  }
  0x76   : > { %p2825_p0 = scmp.ne.s32.totalorder %s2819_s9, 0 }
  0x77   : > { %s2618_s29 = sand.u32 (!%p2825_p0), 1, %s2368_s25   ;;  %p2826_p5 = scmp.ne.s32.totalorder (!%p2825_p0), %s2817_s30, 0 }
  0x78   : > { %291 = sbr.rel (%p2825_p0) target bundleno = 1063 (0x427), region = 48  ;;  %s1779_s11 = sshll.u32 (!%p2825_p0), %s2618_s29, 6 }
  0x79   : > { %s294_s14 = scalar_lea.sflag (!%p2825_p0), [#allocation4], %s2618_s29  ;;  %s2622_s13 = scalar_lea.vmem (!%p2825_p0), [#allocation3], %s1779_s11 }
  0x7f   : > { %2347 = dma.done.wait (%p2826_p5), %s294_s14, 1024  }
  0x80   : > { %2349 = vsyncadd (%p2826_p5), %s294_s14, 4294966272  ;;  %p2827_p11 = scmp.eq.s32.totalorder %s2453_s28, 0 }
  0x82   : > { %2351 = dma.done.wait (%p2827_p11), [#allocation7], 448   ;;  %p2828_p9 = pmov %p2827_p11 }
  0x84   : > { %2353 = vsyncadd (%p2828_p9), [#allocation7], 4294966848  ;;  %p2829_p12 = pmov %p2828_p9 }
  0x85   : > { %p2830_p2 = pmov %p2828_p9 }
  0x86   : > { %2355 = dma.done.wait (%p2829_p12), [#allocation10], 8192  }
  0x87   : > { %2357 = vsyncadd (%p2830_p2), [#allocation10], 4294959104  ;;  %v2388_v0 = vmov 0.0   ;;  %vm2389_vm0 = vmmov 0   ;;  %v2079_v1 = vld [vmem:[%s2622_s13] sm:$0xff]   ;;  %v2080_v2 = vld [vmem:[%s2622_s13 + $0x8] sm:$0xff]  }
  0x88   : > { %1913 = vmatprep.subr.bf16.mxu0 %v2388_v0  ;;  %1919 = vmatprep.subr.bf16.mxu1 %v2388_v0  ;;  %vm351_vm1 = vcmask 130048   ;;  %v342_v3 = vld [vmem:[#allocation6] sm:$0xf]  ;;  %v2081_v4 = vld [vmem:[%s2622_s13 + $0x10] sm:$0xff]   ;;  %v2082_v5 = vld [vmem:[%s2622_s13 + $0x18] sm:$0xff]   ;;  %vm815_vm2 = vcmask 1043456  }
  0x89   : > { %1915 = vmatprep.mubr.msk.bf16.mxu0 %vm2389_vm0, %v2388_v0  ;;  %1921 = vmatprep.mubr.msk.bf16.mxu1 %vm2389_vm0, %v2388_v0  ;;  %v2083_v6 = vld [vmem:[%s2622_s13 + $0x20] sm:$0xff]   ;;  %v2084_v7 = vld [vmem:[%s2622_s13 + $0x28] sm:$0xff]   ;;  %v2085_v8 = vld [vmem:[%s2622_s13 + $0x30] sm:$0xff]   ;;  %v2390_v16 = vmov 0   ;;  %vm396_vm3 = vcmask 191488   ;;  %vm451_vm4 = vcmask 195588  }
  0x8a   : > { %1914 = vmatpush3.bf16.msra.mxu0 %v2079_v1  ;;  %1920 = vmatpush3.bf16.msra.mxu1 %v2080_v2  ;;  %v2086_v9 = vld [vmem:[%s2622_s13 + $0x38] sm:$0xff]   ;;  %v2089_v10 = vld [vmem:[#allocation8 + $0x4] ss:$8 sps:$4 sm:$0xff]   ;;  %v2087_v11 = vld [vmem:[#allocation8] ss:$8 sps:$4 sm:$0xff]   ;;  %vm802_vm5 = vcmask 195584  }
  0x8b   : > { %1925 = vmatprep.subr.bf16.mxu0 %v2388_v0  ;;  %1931 = vmatprep.subr.bf16.mxu1 %v2388_v0  ;;  %v774_v12 = vld [vmem:[#allocation8 + $0x10] sm:$0xff]  ;;  %v2092_v17 = vld [vmem:[#allocation9] ss:$16 sps:$4 sm:$0xff]   ;;  %v2094_v18 = vld [vmem:[#allocation9 + $0x4] ss:$16 sps:$4 sm:$0xff]   ;;  %vm1504_vm6 = vcmask 523264  }
  0x8c   : > { %v1817_v13 = vcombine.high %v774_v12, %v774_v12  ;;  %v1816_v14 = vcombine.low %v774_v12, %v774_v12  ;;  %v2097_v19 = vld [vmem:[#allocation9 + $0xc] ss:$16 sps:$4 sm:$0xff]   ;;  %v2100_v20 = vld [vmem:[#allocation9 + $0x24] ss:$16 sps:$4 sm:$0xff]   ;;  %v2098_v21 = vld [vmem:[#allocation9 + $0x20] ss:$16 sps:$4 sm:$0xff]  }
  0x8d   : > { %1916 = vmatmul.mubr.msk.bf16.vlgmr.msra.gmra.mrb[0].mxu0 %vm351_vm1, %v342_v3  ;;  %1922 = vmatmul.mubr.msk.bf16.vlgmr.msra.gmra.mrb[0].mxu1 %vm351_vm1, %v342_v3  ;;  %v2106_v22 = vld [vmem:[#allocation9 + $0x44] ss:$16 sps:$4 sm:$0xff]   ;;  %v2104_v23 = vld [vmem:[#allocation9 + $0x40] ss:$16 sps:$4 sm:$0xff]   ;;  %s1783_s19 = sshll.u32 %s2618_s29, 5  ;;  %s1896_s16 = sshll.u32 %s2453_s28, 9 }
  0x8e   : > { %1926 = vmatpush3.bf16.msra.mxu0 %v2081_v4  ;;  %1932 = vmatpush3.bf16.msra.mxu1 %v2082_v5  ;;  %v817_v15 = vsel %vm815_vm2, %v1816_v14, 0  ;;  %v2112_v24 = vld [vmem:[#allocation9 + $0x64] ss:$16 sps:$4 sm:$0xff]   ;;  %v2110_v25 = vld [vmem:[#allocation9 + $0x60] ss:$16 sps:$4 sm:$0xff]   ;;  %s339_s23 = scalar_lea.vmem [#allocation11], %s1783_s19  ;;  %s2764_s13 = scalar_lea.hbm %s2813_s7, %s1896_s16 }
  0x8f   : > { %1927 = vmatprep.mubr.msk.bf16.mxu0 %vm2389_vm0, %v2388_v0  ;;  %1933 = vmatprep.mubr.msk.bf16.mxu1 %vm2389_vm0, %v2388_v0  ;;  %v2118_v26 = vld [vmem:[#allocation9 + $0x84] ss:$16 sps:$4 sm:$0xff]   ;;  %v2116_v27 = vld [vmem:[#allocation9 + $0x80] ss:$16 sps:$4 sm:$0xff]   ;;  %s1669_s18 = sshll.u32 %s339_s23, 4  ;;  %s1655_s30 = scalar_lea.sflag [#allocation5], %s2618_s29  ;;  %s2759_s18 = int_to_ptr.vmem [resolvable:$true] %s1669_s18 }
  0x90   : > { %1937 = vmatprep.subr.bf16.mxu0 %v2388_v0  ;;  %1943 = vmatprep.subr.bf16.mxu1 %v2388_v0  ;;  %v2124_v28 = vld [vmem:[#allocation9 + $0xa4] ss:$16 sps:$4 sm:$0xff]   ;;  %v2122_v29 = vld [vmem:[#allocation9 + $0xa0] ss:$16 sps:$4 sm:$0xff]   ;;  %s2302_s28 = scalar_lea.vmem %s2759_s18, 512  ;;  %s2391_s9 = smov [#allocation11]  }
  0x91   : > { %v2130_v30 = vld [vmem:[#allocation9 + $0xc4] ss:$16 sps:$4 sm:$0xff]   ;;  %v2128_v31 = vld [vmem:[#allocation9 + $0xc0] ss:$16 sps:$4 sm:$0xff]   ;;  %p2303_p1 = scmp.ne.s32.totalorder %s2759_s18, %s2302_s28  ;;  %s2306_s15 = sshll.u32 %s2391_s9, 4  ;;  %s2307_s15 = int_to_ptr.vmem [resolvable:$false] %s2306_s15 }
  0x92   : > { %v2136_v32 = vld [vmem:[#allocation9 + $0xe4] ss:$16 sps:$4 sm:$0xff]   ;;  %v2134_v33 = vld [vmem:[#allocation9 + $0xe0] ss:$16 sps:$4 sm:$0xff]   ;;  %s2308_s22 = scalar_lea.vmem %s2307_s15, 1024  ;;  %p2309_p3 = scmp.lt.s32.totalorder %s2759_s18, %s2307_s15 }
  0x93   : > { %v2142_v34 = vld [vmem:[#allocation9 + $0x104] ss:$16 sps:$4 sm:$0xff]   ;;  %v2140_v35 = vld [vmem:[#allocation9 + $0x100] ss:$16 sps:$4 sm:$0xff]   ;;  %p2304_p4 = pnand %p2303_p1, %p2570_p6  ;;  %p2310_p7 = scmp.lt.s32.totalorder %s2308_s22, %s2302_s28 }
  0x94   : > { %v2148_v36 = vld [vmem:[#allocation9 + $0x124] ss:$16 sps:$4 sm:$0xff]   ;;  %v2146_v37 = vld [vmem:[#allocation9 + $0x120] ss:$16 sps:$4 sm:$0xff]  }
  0x95   : > { %1928 = vmatmul.mubr.msk.bf16.vlgmr.msra.gmra.mrb[4].mxu0 %vm351_vm1, %v342_v3  ;;  %1934 = vmatmul.mubr.msk.bf16.vlgmr.msra.gmra.mrb[4].mxu1 %vm351_vm1, %v342_v3  ;;  %v2154_v38 = vld [vmem:[#allocation9 + $0x144] ss:$16 sps:$4 sm:$0xff]   ;;  %v2152_v39 = vld [vmem:[#allocation9 + $0x140] ss:$16 sps:$4 sm:$0xff]   ;;  %p2305_p8 = pneg %p2304_p4  ;;  %p2311_p10 = por %p2310_p7, %p2309_p3 }
  0x96   : > { %1938 = vmatpush3.bf16.msra.mxu0 %v2083_v6  ;;  %1944 = vmatpush3.bf16.msra.mxu1 %v2084_v7  ;;  %v2160_v40 = vld [vmem:[#allocation9 + $0x164] ss:$16 sps:$4 sm:$0xff]   ;;  %v2158_v41 = vld [vmem:[#allocation9 + $0x160] ss:$16 sps:$4 sm:$0xff]   ;;  %v2103_v6 = vld [vmem:[#allocation9 + $0x2c] ss:$16 sps:$4 sm:$0xff]  }
  0x97   : > { %1939 = vmatprep.mubr.msk.bf16.mxu0 %vm2389_vm0, %v2388_v0  ;;  %1945 = vmatprep.mubr.msk.bf16.mxu1 %vm2389_vm0, %v2388_v0  ;;  %v2166_v42 = vld [vmem:[#allocation9 + $0x184] ss:$16 sps:$4 sm:$0xff]   ;;  %v2164_v43 = vld [vmem:[#allocation9 + $0x180] ss:$16 sps:$4 sm:$0xff]   ;;  %p2312_p13 = pnand %p2311_p10, %p2305_p8 }
  0x98   : > { %1949 = vmatprep.subr.bf16.mxu0 %v2388_v0  ;;  %1955 = vmatprep.subr.bf16.mxu1 %v2388_v0  ;;  %v2172_v44 = vld [vmem:[#allocation9 + $0x1a4] ss:$16 sps:$4 sm:$0xff]   ;;  %v2170_v45 = vld [vmem:[#allocation9 + $0x1a0] ss:$16 sps:$4 sm:$0xff]  }
  0x9d   : > { %1940 = vmatmul.mubr.msk.bf16.vlgmr.msra.gmra.mrb[8].mxu0 %vm351_vm1, %v342_v3  ;;  %1946 = vmatmul.mubr.msk.bf16.vlgmr.msra.gmra.mrb[8].mxu1 %vm351_vm1, %v342_v3 }
  0x9e   : > { %1950 = vmatpush3.bf16.msra.mxu0 %v2085_v8  ;;  %1956 = vmatpush3.bf16.msra.mxu1 %v2086_v9  ;;  %v2101_v8 = vld [vmem:[#allocation9 + $0x28] ss:$16 sps:$4 sm:$0xff]  }
  0x9f   : > { %1951 = vmatprep.mubr.msk.bf16.mxu0 %vm2389_vm0, %v2388_v0  ;;  %1957 = vmatprep.mubr.msk.bf16.mxu1 %vm2389_vm0, %v2388_v0 }
  0xa0   : > { %822 = vmatprep.subr.bf16.mxu0 %v2089_v10  ;;  %1325 = vmatprep.subr.bf16.mxu1 %v2094_v18  ;;  %v2109_v10 = vld [vmem:[#allocation9 + $0x4c] ss:$16 sps:$4 sm:$0xff]  }
  0xa5   : > { %1952 = vmatmul.mubr.msk.bf16.vlgmr.msra.gmra.mrb[12].mxu0 %vm351_vm1, %v342_v3  ;;  %1958 = vmatmul.mubr.msk.bf16.vlgmr.msra.gmra.mrb[12].mxu1 %vm351_vm1, %v342_v3  ;;  %v2095_v3 = vld [vmem:[#allocation9 + $0x8] ss:$16 sps:$4 sm:$0xff]  }
  0xa6   : > { %823 = vmatpush1.bf16.msra.mxu0 %v2087_v11  ;;  %854 = vmatprep.mubr.bf16.mxu0 %v2390_v16 }
  0xa7   : > { %1818 = vmatprep.subr.msk.bf16.mxu0 %vm815_vm2, %v1817_v13  ;;  %1326 = vmatpush1.bf16.msra.mxu1 %v2092_v17 }
  0xa8   : > { %1327 = vmatprep.subr.bf16.mxu1 %v2100_v20  ;;  %v2107_v20 = vld [vmem:[#allocation9 + $0x48] ss:$16 sps:$4 sm:$0xff]  }
  0xaa   : > { %825 = vmatpush1.bf16.msra.mxu0 %v817_v15 }
  0xab   : > { %1398 = vmatprep.subr.bf16.mxu0 %v2097_v19  ;;  %1328 = vmatpush1.bf16.msra.mxu1 %v2098_v21 }
  0xac   : > { %1329 = vmatprep.subr.bf16.mxu1 %v2106_v22 }
  0xaf   : > { %1330 = vmatpush1.bf16.msra.mxu1 %v2104_v23  ;;  %v2115_v23 = vld [vmem:[#allocation9 + $0x6c] ss:$16 sps:$4 sm:$0xff]  }
  0xb0   : > { %1331 = vmatprep.subr.bf16.mxu1 %v2112_v24 }
  0xb3   : > { %1332 = vmatpush1.bf16.msra.mxu1 %v2110_v25  ;;  %v2113_v25 = vld [vmem:[#allocation9 + $0x68] ss:$16 sps:$4 sm:$0xff]  }
  0xb4   : > { %1333 = vmatprep.subr.bf16.mxu1 %v2118_v26 }
  0xb7   : > { %1334 = vmatpush1.bf16.msra.mxu1 %v2116_v27  ;;  %v2121_v27 = vld [vmem:[#allocation9 + $0x8c] ss:$16 sps:$4 sm:$0xff]  }
  0xb8   : > { %1335 = vmatprep.subr.bf16.mxu1 %v2124_v28 }
  0xbb   : > { %1336 = vmatpush1.bf16.msra.mxu1 %v2122_v29 }
  0xbc   : > { %1337 = vmatprep.subr.bf16.mxu1 %v2130_v30 }
  0xbf   : > { %1338 = vmatpush1.bf16.msra.mxu1 %v2128_v31 }
  0xc0   : > { %1339 = vmatprep.subr.bf16.mxu1 %v2136_v32 }
  0xc3   : > { %1340 = vmatpush1.bf16.msra.mxu1 %v2134_v33 }
  0xc4   : > { %1341 = vmatprep.subr.bf16.mxu1 %v2142_v34 }
  0xc7   : > { %1342 = vmatpush1.bf16.msra.mxu1 %v2140_v35 }
  0xc8   : > { %1343 = vmatprep.subr.bf16.mxu1 %v2148_v36  ;;  %v2119_v36 = vld [vmem:[#allocation9 + $0x88] ss:$16 sps:$4 sm:$0xff]  }
  0xcb   : > { %1344 = vmatpush1.bf16.msra.mxu1 %v2146_v37 }
  0xcc   : > { %1345 = vmatprep.subr.bf16.mxu1 %v2154_v38 }
  0xcf   : > { %1346 = vmatpush1.bf16.msra.mxu1 %v2152_v39  ;;  %v2127_v39 = vld [vmem:[#allocation9 + $0xac] ss:$16 sps:$4 sm:$0xff]  }
  0xd0   : > { %1347 = vmatprep.subr.bf16.mxu1 %v2160_v40 }
  0xd3   : > { %1348 = vmatpush1.bf16.msra.mxu1 %v2158_v41  ;;  %v2125_v41 = vld [vmem:[#allocation9 + $0xa8] ss:$16 sps:$4 sm:$0xff]  }
  0xd4   : > { %1349 = vmatprep.subr.bf16.mxu1 %v2166_v42  ;;  %v2133_v42 = vld [vmem:[#allocation9 + $0xcc] ss:$16 sps:$4 sm:$0xff]  }
  0xd7   : > { %1350 = vmatpush1.bf16.msra.mxu1 %v2164_v43  ;;  %v2131_v43 = vld [vmem:[#allocation9 + $0xc8] ss:$16 sps:$4 sm:$0xff]  }
  0xd8   : > { %1351 = vmatprep.subr.bf16.mxu1 %v2172_v44  ;;  %v2139_v44 = vld [vmem:[#allocation9 + $0xec] ss:$16 sps:$4 sm:$0xff]  }
  0xdb   : > { %1352 = vmatpush1.bf16.msra.mxu1 %v2170_v45 }
 0x160   : > { %v389_v46 = vpop.f32.mrb[0].mxu0  ;;  %v441_v48 = vpop.f32.mrb[0].mxu1 }
 0x161   : > { %v395_v47 = vpack.c.bf16 %v389_v46, %v389_v46  ;;  %v1917_v49 = vpop.f32.mrb[1].mxu0  ;;  %v447_v50 = vpack.c.bf16 %v441_v48, %v441_v48  ;;  %v1923_v51 = vpop.f32.mrb[1].mxu1  ;;  %v2137_v46 = vld [vmem:[#allocation9 + $0xe8] ss:$16 sps:$4 sm:$0xff]  }
 0x162   : > { %v392_v52 = vpop.f32.mrb[2].mxu0  ;;  %v444_v53 = vpop.f32.mrb[2].mxu1  ;;  %v2143_v48 = vld [vmem:[#allocation9 + $0x108] ss:$16 sps:$4 sm:$0xff]   ;;  %v2151_v49 = vld [vmem:[#allocation9 + $0x12c] ss:$16 sps:$4 sm:$0xff]  }
 0x163   : > { %397 = vst.msk [vmem:[#allocation2] sm:$0xf] %vm396_vm3, %v395_v47  ;;  %v1918_v54 = vpop.f32.mrb[3].mxu0  ;;  %v449_v55 = vrot.slane %v447_v50, 4  ;;  %v1924_v56 = vpop.f32.mrb[3].mxu1 }
 0x164   : > { %v2145_v47 = vld [vmem:[#allocation9 + $0x10c] ss:$16 sps:$4 sm:$0xff]   ;;  %v2155_v51 = vld [vmem:[#allocation9 + $0x148] ss:$16 sps:$4 sm:$0xff]  }
 0x165   : > { %452 = vst.msk [vmem:[#allocation2] sm:$0xf0] %vm451_vm4, %v449_v55  ;;  %v2157_v50 = vld [vmem:[#allocation9 + $0x14c] ss:$16 sps:$4 sm:$0xff]   ;;  %v2161_v53 = vld [vmem:[#allocation9 + $0x168] ss:$16 sps:$4 sm:$0xff]  }
 0x166   : > { %v2163_v52 = vld [vmem:[#allocation9 + $0x16c] ss:$16 sps:$4 sm:$0xff]   ;;  %v2167_v55 = vld [vmem:[#allocation9 + $0x188] ss:$16 sps:$4 sm:$0xff]  }
 0x167   : > { %v2169_v54 = vld [vmem:[#allocation9 + $0x18c] ss:$16 sps:$4 sm:$0xff]  }
 0x168   : > { %v496_v57 = vpop.f32.mrb[4].mxu0  ;;  %v547_v59 = vpop.f32.mrb[4].mxu1  ;;  %v2175_v56 = vld [vmem:[#allocation9 + $0x1ac] ss:$16 sps:$4 sm:$0xff]  }
 0x169   : > { %v502_v58 = vpack.c.bf16 %v496_v57, %v496_v57  ;;  %v1929_v60 = vpop.f32.mrb[5].mxu0  ;;  %v553_v61 = vpack.c.bf16 %v547_v59, %v547_v59  ;;  %v1935_v62 = vpop.f32.mrb[5].mxu1  ;;  %v2173_v57 = vld [vmem:[#allocation9 + $0x1a8] ss:$16 sps:$4 sm:$0xff]   ;;  %v2181_v59 = vld [vmem:[#allocation9 + $0x1cc] ss:$16 sps:$4 sm:$0xff]  }
 0x16a   : > { %v499_v63 = vpop.f32.mrb[6].mxu0  ;;  %v550_v1 = vpop.f32.mrb[6].mxu1  ;;  %v2176_v60 = vld [vmem:[#allocation9 + $0x1c0] ss:$16 sps:$4 sm:$0xff]   ;;  %v2184_v62 = vld [vmem:[#allocation9 + $0x1e4] ss:$16 sps:$4 sm:$0xff]  }
 0x16b   : > { %503 = vst.msk [vmem:[#allocation2 + $0x8] sm:$0xf] %vm396_vm3, %v502_v58  ;;  %v1930_v2 = vpop.f32.mrb[7].mxu0  ;;  %v555_v4 = vrot.slane %v553_v61, 4  ;;  %v1936_v5 = vpop.f32.mrb[7].mxu1 }
 0x16c   : > { %v768_v7 = vld [vmem:[#allocation2] sm:$0xff]  ;;  %v2187_v63 = vld [vmem:[#allocation9 + $0x1ec] ss:$16 sps:$4 sm:$0xff]   ;;  %v2182_v1 = vld [vmem:[#allocation9 + $0x1e0] ss:$16 sps:$4 sm:$0xff]  }
 0x16d   : > { %557 = vst.msk [vmem:[#allocation2 + $0x8] sm:$0xf0] %vm451_vm4, %v555_v4  ;;  %1819 = vmatmul.mubr.msk.bf16.vlgmr.msra.gmra.mrb[16].mxu0 %vm802_vm5, %v768_v7  ;;  %v2178_v58 = vld [vmem:[#allocation9 + $0x1c4] ss:$16 sps:$4 sm:$0xff]   ;;  %v2179_v61 = vld [vmem:[#allocation9 + $0x1c8] ss:$16 sps:$4 sm:$0xff]  }
 0x16e   : > { %864 = vmatprep.mubr.bf16.mxu0 %v2390_v16  ;;  %1399 = vmatpush1.bf16.msra.mxu0 %v2095_v3  ;;  %v2185_v2 = vld [vmem:[#allocation9 + $0x1e8] ss:$16 sps:$4 sm:$0xff]   ;;  %v777_v3 = vlaneseq }
 0x16f   : > { %1400 = vmatprep.subr.bf16.mxu0 %v2103_v6  ;;  %1353 = vmatprep.subr.bf16.mxu1 %v2178_v58  ;;  %v775_v6 = vld [vmem:[%s2809_s3] sm:$0x3] }
 0x170   : > { %v601_v9 = vpop.f32.mrb[8].mxu0  ;;  %v652_v12 = vpop.f32.mrb[8].mxu1  ;;  %1354 = vmatpush1.bf16.msra.mxu1 %v2176_v60  ;;  %v2692_v4 = vshrl.u32 %v777_v3, 7 }
 0x171   : > { %v607_v11 = vpack.c.bf16 %v601_v9, %v601_v9  ;;  %v1941_v13 = vpop.f32.mrb[9].mxu0  ;;  %v658_v14 = vpack.c.bf16 %v652_v12, %v652_v12  ;;  %v1947_v15 = vpop.f32.mrb[9].mxu1  ;;  %1355 = vmatprep.subr.bf16.mxu1 %v2184_v62 }
 0x172   : > { %v604_v17 = vpop.f32.mrb[10].mxu0  ;;  %v655_v18 = vpop.f32.mrb[10].mxu1  ;;  %1401 = vmatpush1.bf16.msra.mxu0 %v2101_v8  ;;  %v779_v5 = vsub.s32 0, %v2692_v4  ;;  %v783_v7 = vsub.s32 1, %v2692_v4  ;;  %v995_v3 = vsub.s32 2, %v2692_v4 }
 0x173   : > { %608 = vst.msk [vmem:[#allocation2 + $0x10] sm:$0xf] %vm396_vm3, %v607_v11  ;;  %v1942_v19 = vpop.f32.mrb[11].mxu0  ;;  %v660_v21 = vrot.slane %v658_v14, 4  ;;  %v1948_v22 = vpop.f32.mrb[11].mxu1  ;;  %1402 = vmatprep.subr.bf16.mxu0 %v2109_v10 }
 0x174   : > { %v769_v24 = vld [vmem:[#allocation2 + $0x8] sm:$0xff]  ;;  %1356 = vmatpush1.bf16.msra.mxu1 %v2182_v1  ;;  %v780_v8 = vrot.slane %v775_v6, %v779_v5  ;;  %v784_v9 = vrot.slane %v775_v6, %v783_v7  ;;  %v983_v6 = vld [vmem:[%s2811_s5] sm:$0xf] }
 0x175   : > { %662 = vst.msk [vmem:[#allocation2 + $0x10] sm:$0xf0] %vm451_vm4, %v660_v21  ;;  %1820 = vmatmul.mubr.msk.bf16.gmra.mrb[20].mxu0 %vm802_vm5, %v769_v24 }
 0x176   : > { %874 = vmatprep.mubr.bf16.mxu0 %v2390_v16  ;;  %1403 = vmatpush1.bf16.msra.mxu0 %v2107_v20 }
 0x177   : > { %1404 = vmatprep.subr.bf16.mxu0 %v2115_v23 }
 0x178   : > { %v706_v26 = vpop.f32.mrb[12].mxu0  ;;  %v757_v29 = vpop.f32.mrb[12].mxu1 }
 0x179   : > { %v712_v28 = vpack.c.bf16 %v706_v26, %v706_v26  ;;  %v1953_v30 = vpop.f32.mrb[13].mxu0  ;;  %v763_v31 = vpack.c.bf16 %v757_v29, %v757_v29  ;;  %v1959_v32 = vpop.f32.mrb[13].mxu1 }
 0x17a   : > { %v709_v33 = vpop.f32.mrb[14].mxu0  ;;  %v760_v34 = vpop.f32.mrb[14].mxu1  ;;  %1405 = vmatpush1.bf16.msra.mxu0 %v2113_v25 }
 0x17b   : > { %713 = vst.msk [vmem:[#allocation2 + $0x18] sm:$0xf] %vm396_vm3, %v712_v28  ;;  %v1954_v35 = vpop.f32.mrb[15].mxu0  ;;  %v765_v37 = vrot.slane %v763_v31, 4  ;;  %v1960_v38 = vpop.f32.mrb[15].mxu1  ;;  %1406 = vmatprep.subr.bf16.mxu0 %v2121_v27 }
 0x17c   : > { %v770_v40 = vld [vmem:[#allocation2 + $0x10] sm:$0xff] }
 0x17d   : > { %767 = vst.msk [vmem:[#allocation2 + $0x18] sm:$0xf0] %vm451_vm4, %v765_v37  ;;  %1821 = vmatmul.mubr.msk.bf16.gmra.mrb[24].mxu0 %vm802_vm5, %v770_v40 }
 0x17e   : > { %884 = vmatprep.mubr.bf16.mxu0 %v2390_v16  ;;  %1407 = vmatpush1.bf16.msra.mxu0 %v2119_v36  ;;  %v2149_v16 = vld [vmem:[#allocation9 + $0x128] ss:$16 sps:$4 sm:$0xff]  }
 0x17f   : > { %1408 = vmatprep.subr.bf16.mxu0 %v2127_v39 }
 0x182   : > { %1409 = vmatpush1.bf16.msra.mxu0 %v2125_v41 }
 0x183   : > { %1410 = vmatprep.subr.bf16.mxu0 %v2133_v42 }
 0x184   : > { %v771_v45 = vld [vmem:[#allocation2 + $0x18] sm:$0xff] }
 0x185   : > { %1822 = vmatmul.mubr.msk.bf16.gmra.mrb[28].mxu0 %vm802_vm5, %v771_v45 }
 0x186   : > { %1411 = vmatpush1.bf16.msra.mxu0 %v2131_v43 }
 0x187   : > { %1412 = vmatprep.subr.bf16.mxu0 %v2139_v44 }
 0x18a   : > { %1413 = vmatpush1.bf16.msra.mxu0 %v2137_v46 }
 0x18b   : > { %1414 = vmatprep.subr.bf16.mxu0 %v2145_v47 }
 0x18e   : > { %1415 = vmatpush1.bf16.msra.mxu0 %v2143_v48 }
 0x18f   : > { %1416 = vmatprep.subr.bf16.mxu0 %v2151_v49 }
 0x192   : > { %1417 = vmatpush1.bf16.msra.mxu0 %v2149_v16 }
 0x193   : > { %1418 = vmatprep.subr.bf16.mxu0 %v2157_v50 }
 0x196   : > { %1419 = vmatpush1.bf16.msra.mxu0 %v2155_v51 }
 0x197   : > { %1420 = vmatprep.subr.bf16.mxu0 %v2163_v52 }
 0x19a   : > { %1421 = vmatpush1.bf16.msra.mxu0 %v2161_v53 }
 0x19b   : > { %1422 = vmatprep.subr.bf16.mxu0 %v2169_v54 }
 0x19e   : > { %1423 = vmatpush1.bf16.msra.mxu0 %v2167_v55 }
 0x19f   : > { %1424 = vmatprep.subr.bf16.mxu0 %v2175_v56 }
 0x1a2   : > { %1425 = vmatpush1.bf16.msra.mxu0 %v2173_v57 }
 0x1a3   : > { %1426 = vmatprep.subr.bf16.mxu0 %v2181_v59 }
 0x1a6   : > { %1427 = vmatpush1.bf16.msra.mxu0 %v2179_v61 }
 0x1a7   : > { %1428 = vmatprep.subr.bf16.mxu0 %v2187_v63 }
 0x1aa   : > { %1429 = vmatpush1.bf16.msra.mxu0 %v2185_v2 }
 0x240   : > { %v856_v10 = vpop.f32.mrb[16].mxu0 }
 0x241   : > { %v857_v11 = vadd.f32 %v856_v10, %v780_v8  ;;  %v858_v12 = vpop.f32.mrb[17].mxu0  ;;  %v2714_v10 = vrot.slane %v983_v6, %v995_v3 }
 0x242   : > { %v859_v13 = vadd.f32 %v858_v12, %v784_v9  ;;  %v860_v14 = vpop.f32.mrb[18].mxu0 }
 0x243   : > { %v861_v15 = vadd.f32 %v860_v14, %v780_v8  ;;  %v862_v17 = vpop.f32.mrb[19].mxu0  ;;  %v895_v19 = vmax.f32 %v857_v11, 0.0  ;;  %v2718_v11 = vrot.slane %v983_v6, %v783_v7 }
 0x244   : > { %v863_v18 = vadd.f32 %v862_v17, %v784_v9  ;;  %v896_v21 = vmax.f32 %v859_v13, 0.0 }
 0x245   : > { %v897_v20 = vmax.f32 %v861_v15, 0.0 }
 0x246   : > { %v898_v22 = vmax.f32 %v863_v18, 0.0 }
 0x247   : > { %v911_v23 = vpack.c.bf16 %v897_v20, %v895_v19 }
 0x248   : > { %v912_v24 = vpack.c.bf16 %v898_v22, %v896_v21  ;;  %v866_v25 = vpop.f32.mrb[20].mxu0 }
 0x249   : > { %v867_v26 = vadd.f32 %v866_v25, %v780_v8  ;;  %v868_v27 = vpop.f32.mrb[21].mxu0 }
 0x24a   : > { %v869_v28 = vadd.f32 %v868_v27, %v784_v9  ;;  %v870_v29 = vpop.f32.mrb[22].mxu0  ;;  %1357 = vmatprep.mubr.bf16.mxu1 %v912_v24  ;;  %1430 = vmatprep.mubr.bf16.mxu0 %v912_v24 }
 0x24b   : > { %v871_v30 = vadd.f32 %v870_v29, %v780_v8  ;;  %v872_v31 = vpop.f32.mrb[23].mxu0  ;;  %1358 = vmatmul.mubr.bf16.vlgmr.msra.gmra.mrb[16].mxu1 %v911_v23  ;;  %1431 = vmatmul.mubr.bf16.vlgmr.msra.gmra.mrb[32].mxu0 %v911_v23  ;;  %v899_v33 = vmax.f32 %v867_v26, 0.0 }
 0x24c   : > { %v873_v32 = vadd.f32 %v872_v31, %v784_v9  ;;  %v900_v35 = vmax.f32 %v869_v28, 0.0 }
 0x24d   : > { %v901_v34 = vmax.f32 %v871_v30, 0.0 }
 0x24e   : > { %v902_v36 = vmax.f32 %v873_v32, 0.0 }
 0x24f   : > { %v913_v37 = vpack.c.bf16 %v901_v34, %v899_v33 }
 0x250   : > { %v914_v38 = vpack.c.bf16 %v902_v36, %v900_v35  ;;  %v876_v39 = vpop.f32.mrb[24].mxu0 }
 0x251   : > { %v877_v40 = vadd.f32 %v876_v39, %v780_v8  ;;  %v878_v41 = vpop.f32.mrb[25].mxu0 }
 0x252   : > { %v879_v42 = vadd.f32 %v878_v41, %v784_v9  ;;  %v880_v43 = vpop.f32.mrb[26].mxu0  ;;  %1367 = vmatprep.mubr.bf16.mxu1 %v914_v38  ;;  %1440 = vmatprep.mubr.bf16.mxu0 %v914_v38 }
 0x253   : > { %v881_v44 = vadd.f32 %v880_v43, %v780_v8  ;;  %v882_v45 = vpop.f32.mrb[27].mxu0  ;;  %1368 = vmatmul.mubr.bf16.gmra.mrb[20].mxu1 %v913_v37  ;;  %1441 = vmatmul.mubr.bf16.gmra.mrb[36].mxu0 %v913_v37  ;;  %v903_v47 = vmax.f32 %v877_v40, 0.0 }
 0x254   : > { %v883_v46 = vadd.f32 %v882_v45, %v784_v9  ;;  %v904_v49 = vmax.f32 %v879_v42, 0.0 }
 0x255   : > { %v905_v48 = vmax.f32 %v881_v44, 0.0 }
 0x256   : > { %v906_v16 = vmax.f32 %v883_v46, 0.0 }
 0x257   : > { %v915_v50 = vpack.c.bf16 %v905_v48, %v903_v47 }
 0x258   : > { %v916_v51 = vpack.c.bf16 %v906_v16, %v904_v49  ;;  %v886_v52 = vpop.f32.mrb[28].mxu0 }
 0x259   : > { %v887_v53 = vadd.f32 %v886_v52, %v780_v8  ;;  %v888_v54 = vpop.f32.mrb[29].mxu0 }
 0x25a   : > { %v889_v55 = vadd.f32 %v888_v54, %v784_v9  ;;  %v890_v56 = vpop.f32.mrb[30].mxu0  ;;  %1377 = vmatprep.mubr.bf16.mxu1 %v916_v51  ;;  %1450 = vmatprep.mubr.bf16.mxu0 %v916_v51 }
 0x25b   : > { %v891_v57 = vadd.f32 %v890_v56, %v780_v8  ;;  %v892_v58 = vpop.f32.mrb[31].mxu0  ;;  %1378 = vmatmul.mubr.bf16.gmra.mrb[24].mxu1 %v915_v50  ;;  %1451 = vmatmul.mubr.bf16.gmra.mrb[40].mxu0 %v915_v50  ;;  %v907_v60 = vmax.f32 %v887_v53, 0.0  ;;  %v999_v8 = vsub.s32 3, %v2692_v4 }
 0x25c   : > { %v893_v59 = vadd.f32 %v892_v58, %v784_v9  ;;  %v908_v62 = vmax.f32 %v889_v55, 0.0  ;;  %v2712_v9 = vrot.slane %v983_v6, %v779_v5 }
 0x25d   : > { %v909_v61 = vmax.f32 %v891_v57, 0.0  ;;  %v2720_v12 = vrot.slane %v983_v6, %v999_v8 }
 0x25e   : > { %v910_v63 = vmax.f32 %v893_v59, 0.0 }
 0x25f   : > { %v917_v1 = vpack.c.bf16 %v909_v61, %v907_v60 }
 0x260   : > { %v918_v2 = vpack.c.bf16 %v910_v63, %v908_v62 }
 0x262   : > { %1387 = vmatprep.mubr.bf16.mxu1 %v918_v2  ;;  %1460 = vmatprep.mubr.bf16.mxu0 %v918_v2 }
 0x263   : > { %1388 = vmatmul.mubr.bf16.gmra.mrb[28].mxu1 %v917_v1  ;;  %1461 = vmatmul.mubr.bf16.gmra.mrb[44].mxu0 %v917_v1 }
 0x264   : > { %1572 = vmatprep.mubr.f32.mxu1 %v2388_v0  ;;  %1643 = vmatprep.mubr.f32.mxu0 %v2388_v0 }
 0x31e   : > { %v1359_v0 = vpop.f32.mrb[16].mxu1  ;;  %v1432_v13 = vpop.f32.mrb[32].mxu0 }
 0x31f   : > { %v1360_v14 = vadd.f32 %v1359_v0, %v2712_v9  ;;  %v1433_v15 = vadd.f32 %v1432_v13, %v2714_v10  ;;  %v1361_v17 = vpop.f32.mrb[17].mxu1  ;;  %v1434_v18 = vpop.f32.mrb[33].mxu0 }
 0x320   : > { %v1362_v19 = vadd.f32 %v1361_v17, %v2718_v11  ;;  %v1435_v5 = vadd.f32 %v1434_v18, %v2720_v12  ;;  %v1363_v20 = vpop.f32.mrb[18].mxu1  ;;  %v1436_v21 = vpop.f32.mrb[34].mxu0 }
 0x321   : > { %v1364_v4 = vadd.f32 %v1363_v20, %v2712_v9  ;;  %v1437_v7 = vadd.f32 %v1436_v21, %v2714_v10  ;;  %v1365_v22 = vpop.f32.mrb[19].mxu1  ;;  %v1438_v23 = vpop.f32.mrb[35].mxu0  ;;  %v1471_v26 = vmax.f32 %v1360_v14, 0.0  ;;  %v1473_v27 = vmax.f32 %v1433_v15, 0.0 }
 0x322   : > { %v1366_v24 = vadd.f32 %v1365_v22, %v2718_v11  ;;  %v1439_v25 = vadd.f32 %v1438_v23, %v2720_v12  ;;  %v1472_v30 = vmax.f32 %v1362_v19, 0.0  ;;  %v1474_v31 = vmax.f32 %v1435_v5, 0.0 }
 0x323   : > { %v1475_v28 = vmax.f32 %v1364_v4, 0.0  ;;  %v1477_v29 = vmax.f32 %v1437_v7, 0.0 }
 0x324   : > { %v1476_v32 = vmax.f32 %v1366_v24, 0.0  ;;  %v1478_v33 = vmax.f32 %v1439_v25, 0.0 }
 0x325   : > { %v1963_v34 = vpack.c.bf16 %v1475_v28, %v1471_v26  ;;  %v1979_v35 = vpack.c.bf16 %v1477_v29, %v1473_v27 }
 0x326   : > { %v1961_v36 = vpack.c.bf16 %v1476_v32, %v1472_v30  ;;  %v1977_v37 = vpack.c.bf16 %v1478_v33, %v1474_v31  ;;  %v1369_v38 = vpop.f32.mrb[20].mxu1  ;;  %v1442_v39 = vpop.f32.mrb[36].mxu0 }
 0x327   : > { %v1370_v40 = vadd.f32 %v1369_v38, %v2712_v9  ;;  %v1443_v41 = vadd.f32 %v1442_v39, %v2714_v10  ;;  %v1371_v42 = vpop.f32.mrb[21].mxu1  ;;  %v1444_v43 = vpop.f32.mrb[37].mxu0 }
 0x328   : > { %v1372_v44 = vadd.f32 %v1371_v42, %v2718_v11  ;;  %v1445_v45 = vadd.f32 %v1444_v43, %v2720_v12  ;;  %v1373_v46 = vpop.f32.mrb[22].mxu1  ;;  %v1446_v47 = vpop.f32.mrb[38].mxu0  ;;  %1962 = vmatprep.subr.bf16.mxu1 %v1961_v36  ;;  %1978 = vmatprep.subr.bf16.mxu0 %v1977_v37 }
 0x329   : > { %v1374_v48 = vadd.f32 %v1373_v46, %v2712_v9  ;;  %v1447_v49 = vadd.f32 %v1446_v47, %v2714_v10  ;;  %v1375_v16 = vpop.f32.mrb[23].mxu1  ;;  %v1448_v50 = vpop.f32.mrb[39].mxu0  ;;  %1964 = vmatpush1.bf16.msra.mxu1 %v1963_v34  ;;  %1980 = vmatpush1.bf16.msra.mxu0 %v1979_v35  ;;  %v1479_v53 = vmax.f32 %v1370_v40, 0.0  ;;  %v1481_v54 = vmax.f32 %v1443_v41, 0.0 }
 0x32a   : > { %v1376_v51 = vadd.f32 %v1375_v16, %v2718_v11  ;;  %v1449_v52 = vadd.f32 %v1448_v50, %v2720_v12  ;;  %v1480_v57 = vmax.f32 %v1372_v44, 0.0  ;;  %v1482_v58 = vmax.f32 %v1445_v45, 0.0 }
 0x32b   : > { %v1483_v55 = vmax.f32 %v1374_v48, 0.0  ;;  %v1485_v56 = vmax.f32 %v1447_v49, 0.0 }
 0x32c   : > { %v1484_v59 = vmax.f32 %v1376_v51, 0.0  ;;  %v1486_v60 = vmax.f32 %v1449_v52, 0.0 }
 0x32d   : > { %v1967_v61 = vpack.c.bf16 %v1483_v55, %v1479_v53  ;;  %v1983_v62 = vpack.c.bf16 %v1485_v56, %v1481_v54 }
 0x32e   : > { %v1965_v63 = vpack.c.bf16 %v1484_v59, %v1480_v57  ;;  %v1981_v1 = vpack.c.bf16 %v1486_v60, %v1482_v58  ;;  %v1379_v2 = vpop.f32.mrb[24].mxu1  ;;  %v1452_v3 = vpop.f32.mrb[40].mxu0 }
 0x32f   : > { %v1380_v6 = vadd.f32 %v1379_v2, %v2712_v9  ;;  %v1453_v8 = vadd.f32 %v1452_v3, %v2714_v10  ;;  %v1381_v0 = vpop.f32.mrb[25].mxu1  ;;  %v1454_v13 = vpop.f32.mrb[41].mxu0 }
 0x330   : > { %v1382_v14 = vadd.f32 %v1381_v0, %v2718_v11  ;;  %v1455_v15 = vadd.f32 %v1454_v13, %v2720_v12  ;;  %v1383_v17 = vpop.f32.mrb[26].mxu1  ;;  %v1456_v18 = vpop.f32.mrb[42].mxu0  ;;  %1966 = vmatprep.subr.bf16.mxu1 %v1965_v63  ;;  %1982 = vmatprep.subr.bf16.mxu0 %v1981_v1 }
 0x331   : > { %v1384_v19 = vadd.f32 %v1383_v17, %v2712_v9  ;;  %v1457_v5 = vadd.f32 %v1456_v18, %v2714_v10  ;;  %v1385_v20 = vpop.f32.mrb[27].mxu1  ;;  %v1458_v21 = vpop.f32.mrb[43].mxu0  ;;  %1968 = vmatpush1.bf16.msra.mxu1 %v1967_v61  ;;  %1984 = vmatpush1.bf16.msra.mxu0 %v1983_v62  ;;  %v1487_v22 = vmax.f32 %v1380_v6, 0.0  ;;  %v1489_v23 = vmax.f32 %v1453_v8, 0.0 }
 0x332   : > { %v1386_v4 = vadd.f32 %v1385_v20, %v2718_v11  ;;  %v1459_v7 = vadd.f32 %v1458_v21, %v2720_v12  ;;  %v1488_v26 = vmax.f32 %v1382_v14, 0.0  ;;  %v1490_v27 = vmax.f32 %v1455_v15, 0.0 }
 0x333   : > { %v1491_v24 = vmax.f32 %v1384_v19, 0.0  ;;  %v1493_v25 = vmax.f32 %v1457_v5, 0.0 }
 0x334   : > { %v1492_v28 = vmax.f32 %v1386_v4, 0.0  ;;  %v1494_v29 = vmax.f32 %v1459_v7, 0.0 }
 0x335   : > { %v1971_v30 = vpack.c.bf16 %v1491_v24, %v1487_v22  ;;  %v1987_v31 = vpack.c.bf16 %v1493_v25, %v1489_v23 }
 0x336   : > { %v1969_v32 = vpack.c.bf16 %v1492_v28, %v1488_v26  ;;  %v1985_v33 = vpack.c.bf16 %v1494_v29, %v1490_v27  ;;  %v1389_v34 = vpop.f32.mrb[28].mxu1  ;;  %v1462_v35 = vpop.f32.mrb[44].mxu0 }
 0x337   : > { %v1390_v36 = vadd.f32 %v1389_v34, %v2712_v9  ;;  %v1463_v37 = vadd.f32 %v1462_v35, %v2714_v10  ;;  %v1391_v38 = vpop.f32.mrb[29].mxu1  ;;  %v1464_v39 = vpop.f32.mrb[45].mxu0 }
 0x338   : > { %v1392_v40 = vadd.f32 %v1391_v38, %v2718_v11  ;;  %v1465_v41 = vadd.f32 %v1464_v39, %v2720_v12  ;;  %v1393_v42 = vpop.f32.mrb[30].mxu1  ;;  %v1466_v43 = vpop.f32.mrb[46].mxu0  ;;  %1970 = vmatprep.subr.bf16.mxu1 %v1969_v32  ;;  %1986 = vmatprep.subr.bf16.mxu0 %v1985_v33 }
 0x339   : > { %v1394_v44 = vadd.f32 %v1393_v42, %v2712_v9  ;;  %v1467_v45 = vadd.f32 %v1466_v43, %v2714_v10  ;;  %v1395_v46 = vpop.f32.mrb[31].mxu1  ;;  %v1468_v47 = vpop.f32.mrb[47].mxu0  ;;  %1972 = vmatpush1.bf16.msra.mxu1 %v1971_v30  ;;  %1988 = vmatpush1.bf16.msra.mxu0 %v1987_v31  ;;  %v1495_v16 = vmax.f32 %v1390_v36, 0.0  ;;  %v1497_v50 = vmax.f32 %v1463_v37, 0.0 }
 0x33a   : > { %v1396_v48 = vadd.f32 %v1395_v46, %v2718_v11  ;;  %v1469_v49 = vadd.f32 %v1468_v47, %v2720_v12  ;;  %v1496_v53 = vmax.f32 %v1392_v40, 0.0  ;;  %v1498_v54 = vmax.f32 %v1465_v41, 0.0  ;;  %v1503_v11 = vld [vmem:[%s2812_s6] sm:$0xff] }
 0x33b   : > { %v1499_v51 = vmax.f32 %v1394_v44, 0.0  ;;  %v1501_v52 = vmax.f32 %v1467_v45, 0.0 }
 0x33c   : > { %v1500_v55 = vmax.f32 %v1396_v48, 0.0  ;;  %v1502_v56 = vmax.f32 %v1469_v49, 0.0 }
 0x33d   : > { %v1975_v9 = vpack.c.bf16 %v1499_v51, %v1495_v16  ;;  %v1991_v10 = vpack.c.bf16 %v1501_v52, %v1497_v50 }
 0x33e   : > { %v1973_v57 = vpack.c.bf16 %v1500_v55, %v1496_v53  ;;  %v1989_v58 = vpack.c.bf16 %v1502_v56, %v1498_v54 }
 0x340   : > { %1974 = vmatprep.subr.bf16.mxu1 %v1973_v57  ;;  %1990 = vmatprep.subr.bf16.mxu0 %v1989_v58 }
 0x341   : > { %1976 = vmatpush1.bf16.msra.mxu1 %v1975_v9  ;;  %1992 = vmatpush1.bf16.msra.mxu0 %v1991_v10 }
 0x344   : > { %1887 = vmatmul.mubr.msk.f32.vlgmr.msra.gmra.mrb[32].mxu1 %vm1504_vm6, %v1503_v11  ;;  %1888 = vmatmul.mubr.msk.f32.vlgmr.msra.gmra.mrb[48].mxu0 %vm1504_vm6, %v1503_v11 }
 0x417   : > { %v1574_v12 = vpop.f32.mrb[32].mxu1  ;;  %v1645_v59 = vpop.f32.mrb[48].mxu0 }
 0x418   : > { %1650 = vst [vmem:[%s339_s23] sm:$0xff] %v1574_v12  ;;  %1652 = vst [vmem:[%s339_s23 + $0x10] sm:$0xff] %v1645_v59  ;;  %v1576_v60 = vpop.f32.mrb[33].mxu1  ;;  %v1647_v61 = vpop.f32.mrb[49].mxu0 }
 0x419   : > { %1651 = vst [vmem:[%s339_s23 + $0x8] sm:$0xff] %v1576_v60  ;;  %1653 = vst [vmem:[%s339_s23 + $0x18] sm:$0xff] %v1647_v61 }
 0x41a   : > { %2315 = shalt.err (!%p2312_p13)
}
 0x41b   : > { %s2316_s29 = scalar_lea.hbm %s2764_s13, 512  ;;  %s2320_s19 = scalar_lea.hbm %s2813_s7, 1024 }
 0x41c   : > { %p2317_p0 = scmp.ne.s32.totalorder %s2764_s13, %s2316_s29  ;;  %p2321_p9 = scmp.lt.u32.totalorder %s2764_s13, %s2813_s7 }
 0x41d   : > { %p2322_p12 = scmp.lt.u32.totalorder %s2320_s19, %s2316_s29  ;;  %p2324_p1 = scmp.lt.u32.totalorder %s2316_s29, %s2764_s13 }
 0x41e   : > { %p2318_p5 = pnand %p2317_p0, %p2570_p6 }
 0x41f   : > { %p2323_p2 = por %p2322_p12, %p2321_p9 }
 0x420   : > { %p2319_p11 = pneg %p2318_p5 }
 0x421   : > { %p2325_p4 = por %p2324_p1, %p2323_p2 }
 0x423   : > { %p2326_p8 = pnand %p2325_p4, %p2319_p11 }
 0x425   : > { %2329 = shalt.err (!%p2326_p8)
}
 0x426   : > { %2007 = dma.vmem_to_hbm [thread:$0]  (%p2570_p6), %s2759_s18, 512, %s2764_s13, %s1655_s30  }
 0x427 PF: > { %s1681_s11 = sand.u32 1, %s2364_s24   ;;  %p2831_p3 = scmp.ne.s32.totalorder %s2818_s8, 0 }
 0x428   : > { %p2832_p7 = scmp.ge.s32.totalorder %s2376_s27, 2  ;;  %s1682_s14 = scalar_lea.sflag [#allocation5], %s1681_s11 }
 0x42a   : > { %p2024_p10 = pnand %p2832_p7, %p2831_p3 }
 0x42c   : > { %2359 = dma.done.wait (!%p2024_p10), %s1682_s14, 512  }
 0x42d   : > { %2361 = vsyncadd (!%p2024_p10), %s1682_s14, 4294966784  ;;  %p22_p13 = scmp.ge.s32.totalorder %s2556_s17, 4   ;;  %s2833_s24 = smov %s2368_s25 }
 0x42e   : > { %s2834_s25 = smov %s2372_s26  ;;  %s2835_s26 = smov %s2566_s20 }
 0x42f   : > { %s2836_s27 = smov %s2556_s17  ;;  %24 = sbr.rel (!%p22_p13) target bundleno = 7 (0x7), region = 112 }
 0x436   :  { %1687 = vsyncpa [#allocation4], 1 }
 0x437   :  { %1689 = vsyncpa [#allocation4 + $0x1], 1 }
 0x438   :  { %1690 = vsyncpa [#allocation7], 1 }
 0x439   :  { %1691 = vsyncpa [#allocation10], 1 }
 0x43a   :  { %1692 = vsyncpa [#allocation5], 1 }
 0x43b   :  { %1694 = vsyncpa [#allocation5 + $0x1], 1 }

</bundles_post_ra>
